<compile_context>
chip_gen: v5e
topology: v5e:2x2
jax: 0.10.0
libtpu: 0.0.40
codegen_flags: <defaults>
</compile_context>

<pallas_src>
import jax
import jax.numpy as jnp
from jax import lax
from jax.experimental import pallas as pl
from jax.experimental.pallas import tpu as pltpu

BN_EPS = 1e-5


def _ghost_bottleneck_kernel(x_ref, w1_ref, bn1_ref, w2_ref, bn2_ref, out_ref,
                             h1_sc, h2_sc,
                             bn1_mean_sc, bn1_m2_sc,
                             bn2_mean_sc, bn2_m2_sc):
    # x_ref:   (C_in, HW)      one sample, lane-dense pixels
    # w1_ref:  (EXP, C_in)     fused ghost-module-1 weight
    # bn1_ref: (EXP, 2)        columns = [gamma, beta]
    # w2_ref:  (C_OUT, EXP)    fused ghost-module-2 weight
    # bn2_ref: (C_OUT, 2)
    # out_ref: (N, C_OUT, HW)  full output, resident across the grid
    # h1_sc:   (N, EXP, HW)    stage-1 pre-BN activations (resident)
    # h2_sc:   (N, C_OUT, HW)  stage-2 pre-BN activations (resident)
    # bn*_mean_sc / bn*_m2_sc: (C, 1) running mean / centered M2; after the
    #     stage finalize they are overwritten with (scale, shift).
    p = pl.program_id(0)          # pass: 0 = stage 1, 1 = stage 2
    n = pl.program_id(1)          # sample index
    num_n = pl.num_programs(1)
    hw = x_ref.shape[-1]
    inv_hw = 1.0 / hw

    def combine(mean_ref, m2_ref, t_mean, t_m2):
        # Chan et al. parallel-variance merge of this tile's (mean, M2) into
        # the running per-channel statistics (numerically robust; avoids the
        # E[x^2] - mu^2 cancellation).  Prior count = n * hw, tile count = hw.
        na = (n * hw).astype(jnp.float32)
        nb = float(hw)
        tot = na + nb
        delta = t_mean - mean_ref[...]
        new_mean = mean_ref[...] + delta * (nb / tot)
        new_m2 = m2_ref[...] + t_m2 + delta * delta * (na * nb / tot)
        mean_ref[...] = new_mean
        m2_ref[...] = new_m2
        return new_mean, new_m2, tot

    # ---------------- pass 0: GhostModule 1 + BN-1 statistics ----------------
    @pl.when(p == 0)
    def _pass0():
        @pl.when(n == 0)
        def _():
            bn1_mean_sc[...] = jnp.zeros_like(bn1_mean_sc)
            bn1_m2_sc[...] = jnp.zeros_like(bn1_m2_sc)

        # Pointwise conv + ghost depthwise conv + concat, pre-folded into one
        # MXU matmul (biases cancelled by the training-mode BN).
        h1 = jnp.dot(w1_ref[...], x_ref[...],
                     preferred_element_type=jnp.float32)            # (EXP, HW)
        h1_sc[n] = h1

        # Tile mean via the weight: mean_lanes(h1) == w1 @ mean_lanes(x);
        # reduces a (C_in, HW) array instead of (EXP, HW) -> 8x less XLU work.
        x_mean = jnp.sum(x_ref[...].astype(jnp.float32), axis=-1,
                         keepdims=True) * inv_hw                    # (C_in, 1)
        t_mean = jnp.dot(w1_ref[...].astype(jnp.float32), x_mean,
                         preferred_element_type=jnp.float32)        # (EXP, 1)
        d = h1 - t_mean
        t_m2 = jnp.sum(d * d, axis=-1, keepdims=True)               # (EXP, 1)

        mean1, m2_1, tot = combine(bn1_mean_sc, bn1_m2_sc, t_mean, t_m2)

        @pl.when(n == num_n - 1)
        def _():
            # Finalize BN-1 with the *global* stats; overwrite the stat
            # scratch with (scale, shift) for pass 1.
            var1 = m2_1 / tot                                       # biased
            scale1 = lax.rsqrt(var1 + BN_EPS) * bn1_ref[:, 0:1]
            shift1 = bn1_ref[:, 1:2] - mean1 * scale1
            bn1_mean_sc[...] = scale1
            bn1_m2_sc[...] = shift1

    # ------------- pass 1: BN1+ReLU, GhostModule 2, BN-2, output -------------
    @pl.when(p == 1)
    def _pass1():
        @pl.when(n == 0)
        def _():
            bn2_mean_sc[...] = jnp.zeros_like(bn2_mean_sc)
            bn2_m2_sc[...] = jnp.zeros_like(bn2_m2_sc)

        # bn1_mean_sc / bn1_m2_sc now hold BN-1 (scale, shift).
        a = jnp.maximum(h1_sc[n] * bn1_mean_sc[...] + bn1_m2_sc[...], 0.0)
        h2 = jnp.dot(w2_ref[...], a.astype(w2_ref.dtype),
                     preferred_element_type=jnp.float32)            # (C_OUT, HW)
        h2_sc[n] = h2

        # Only C_OUT (=8) rows -> cheap to reduce h2 directly.
        t_mean = jnp.sum(h2, axis=-1, keepdims=True) * inv_hw       # (C_OUT, 1)
        d = h2 - t_mean
        t_m2 = jnp.sum(d * d, axis=-1, keepdims=True)

        mean2, m2_2, tot = combine(bn2_mean_sc, bn2_m2_sc, t_mean, t_m2)

        @pl.when(n == num_n - 1)
        def _():
            var2 = m2_2 / tot
            scale2 = lax.rsqrt(var2 + BN_EPS) * bn2_ref[:, 0:1]     # (C_OUT, 1)
            shift2 = bn2_ref[:, 1:2] - mean2 * scale2
            # Normalize all resident h2 tiles and write the whole output.
            for i in range(h2_sc.shape[0]):                          # static N
                out_ref[i] = (h2_sc[i] * scale2 + shift2).astype(out_ref.dtype)


def ghost_bottleneck_forward(x_nchw, params, *, io_dtype=None):
    """x_nchw: (N, C_in, H, W); returns (N, C_out, H, W) in io_dtype."""
    N, C, H, W = x_nchw.shape
    HW = H * W
    c_out = params["bn2_gamma"].shape[-1]
    exp = params["bn1_gamma"].shape[-1]
    io_dtype = x_nchw.dtype if io_dtype is None else io_dtype

    # (N, C, H, W) -> (N, C, H*W): a pure reshape, no HBM transpose round trip.
    x = x_nchw.reshape(N, C, HW).astype(io_dtype)

    # Fold ghost depthwise 1x1 conv + concat into the pointwise matmul weight
    # (exact for s=2: one ghost output per identity channel).  Conv biases are
    # per-channel constants cancelled by the training-mode BatchNorm -> dropped.
    w1_cat = jnp.concatenate(
        [params["w1"].T, (params["w1"] * params["dw1_w"]).T], axis=0
    ).astype(io_dtype)                                               # (EXP, C_in)
    w2_cat = jnp.concatenate(
        [params["w2"].T, (params["w2"] * params["dw2_w"]).T], axis=0
    ).astype(io_dtype)                                               # (C_OUT, EXP)

    # Packed per-channel BN params, kept in f32 (statistics path stays f32).
    bn1 = jnp.concatenate(
        [params["bn1_gamma"].reshape(-1, 1), params["bn1_beta"].reshape(-1, 1)],
        axis=1).astype(jnp.float32)                                  # (EXP, 2)
    bn2 = jnp.concatenate(
        [params["bn2_gamma"].reshape(-1, 1), params["bn2_beta"].reshape(-1, 1)],
        axis=1).astype(jnp.float32)                                  # (C_OUT, 2)

    out = pl.pallas_call(
        _ghost_bottleneck_kernel,
        out_shape=jax.ShapeDtypeStruct((N, c_out, HW), io_dtype),
        grid=(2, N),  # (pass, sample); both carry accumulator deps.
        in_specs=[
            pl.BlockSpec((pl.Squeezed(), C, HW), lambda p, n: (n, 0, 0)),
            pl.BlockSpec((exp, C), lambda p, n: (0, 0)),
            pl.BlockSpec((exp, 2), lambda p, n: (0, 0)),
            pl.BlockSpec((c_out, exp), lambda p, n: (0, 0)),
            pl.BlockSpec((c_out, 2), lambda p, n: (0, 0)),
        ],
        # Output stays resident in VMEM across the grid, written once at end.
        out_specs=pl.BlockSpec((N, c_out, HW), lambda p, n: (0, 0, 0)),
        scratch_shapes=[
            pltpu.VMEM((N, exp, HW), jnp.float32),    # h1 (resident)
            pltpu.VMEM((N, c_out, HW), jnp.float32),  # h2 (resident)
            pltpu.VMEM((exp, 1), jnp.float32),        # BN1 mean -> scale
            pltpu.VMEM((exp, 1), jnp.float32),        # BN1 M2   -> shift
            pltpu.VMEM((c_out, 1), jnp.float32),      # BN2 mean
            pltpu.VMEM((c_out, 1), jnp.float32),      # BN2 M2
        ],
        compiler_params=pltpu.CompilerParams(
            dimension_semantics=("arbitrary", "arbitrary")),
    )(x, w1_cat, bn1, w2_cat, bn2)

    return out.reshape(N, c_out, H, W)


def ghost_bottleneck_ref(x_nchw, p):
    """Pure-JAX reference (faithful to the PyTorch module, incl. conv biases)."""
    N, C, H, W = x_nchw.shape
    x2d = jnp.transpose(x_nchw, (0, 2, 3, 1)).reshape(N * H * W, C)

    def bn(h, g, b):
        mu = h.mean(0, keepdims=True)
        var = ((h - mu) ** 2).mean(0, keepdims=True)
        return (h - mu) / jnp.sqrt(var + BN_EPS) * g + b

    y1 = x2d @ p["w1"] + p["b1"]
    h1 = jnp.concatenate([y1, y1 * p["dw1_w"] + p["dw1_b"]], axis=-1)
    h1 = jnp.maximum(bn(h1, p["bn1_gamma"], p["bn1_beta"]), 0.0)
    y2 = h1 @ p["w2"] + p["b2"]
    h2 = jnp.concatenate([y2, y2 * p["dw2_w"] + p["dw2_b"]], axis=-1)
    h2 = bn(h2, p["bn2_gamma"], p["bn2_beta"])
    c_out = h2.shape[-1]
    return jnp.transpose(h2.reshape(N, H, W, c_out), (0, 3, 1, 2))


def init_params(key, c_in, c_out, expansion):
    """Deterministic synthetic parameters matching the PyTorch shapes (s=2, d=1)."""
    id1 = expansion // 2            # GhostModule 1 identity channels
    tr1 = expansion - id1           # ghost (depthwise) channels
    id2 = c_out // 2
    tr2 = c_out - id2
    ks = jax.random.split(key, 12)

    def rn(k, shape, scale=0.1):
        return scale * jax.random.normal(k, shape, dtype=jnp.float32)

    return {
        # pointwise_conv of GhostModule 1: Conv2d(c_in, id1, 1, bias=True)
        "w1": rn(ks[0], (c_in, id1)),
        "b1": rn(ks[1], (1, id1)),
        # ghost conv of GhostModule 1: Conv2d(id1, tr1, 1, groups=id1, bias=True)
        "dw1_w": rn(ks[2], (1, tr1), 1.0),
        "dw1_b": rn(ks[3], (1, tr1)),
        # BatchNorm2d(expansion)
        "bn1_gamma": 1.0 + rn(ks[4], (1, expansion)),
        "bn1_beta": rn(ks[5], (1, expansion)),
        # pointwise_conv of GhostModule 2: Conv2d(expansion, id2, 1, bias=True)
        "w2": rn(ks[6], (expansion, id2)),
        "b2": rn(ks[7], (1, id2)),
        # ghost conv of GhostModule 2
        "dw2_w": rn(ks[8], (1, tr2), 1.0),
        "dw2_b": rn(ks[9], (1, tr2)),
        # BatchNorm2d(c_out)
        "bn2_gamma": 1.0 + rn(ks[10], (1, c_out)),
        "bn2_beta": rn(ks[11], (1, c_out)),
    }


if __name__ == "__main__":
    key = jax.random.PRNGKey(0)
    k_x, k_p = jax.random.split(key)

    N, C_IN, H, W = 2, 4, 16, 16
    C_OUT, EXPANSION = 8, 32

    x = jax.random.normal(k_x, (N, C_IN, H, W), dtype=jnp.float32)
    params = init_params(k_p, C_IN, C_OUT, EXPANSION)

    ref = ghost_bottleneck_ref(x, params)

    # f32 I/O path: tight check against the pure-JAX reference.
    out = jax.block_until_ready(ghost_bottleneck_forward(x, params))
    assert out.shape == (N, C_OUT, H, W), out.shape
    assert jnp.allclose(out, ref, atol=1e-4, rtol=1e-4), (
        float(jnp.max(jnp.abs(out - ref))))

    # bf16 I/O path (halves HBM traffic / VMEM footprint on v6e/v7x; BN math
    # and MXU accumulation stay f32).  Loose tolerance: I/O is quantized.
    out_bf = jax.block_until_ready(
        ghost_bottleneck_forward(x, params, io_dtype=jnp.bfloat16))
    assert out_bf.shape == (N, C_OUT, H, W), out_bf.shape
    assert jnp.allclose(out_bf.astype(jnp.float32), ref, atol=1e-1, rtol=5e-2), (
        float(jnp.max(jnp.abs(out_bf.astype(jnp.float32) - ref))))

    print("KERNEL_OK")
</pallas_src>

<mosaic_0001>
module attributes {stable_mosaic.version = 11 : i64} {
  func.func @_ghost_bottleneck_kernel(%arg0: i32, %arg1: i32, %arg2: memref<1x4x256xf32, #tpu.memory_space<vmem>>, %arg3: memref<32x4xf32, #tpu.memory_space<vmem>>, %arg4: memref<32x2xf32, #tpu.memory_space<vmem>>, %arg5: memref<8x32xf32, #tpu.memory_space<vmem>>, %arg6: memref<8x2xf32, #tpu.memory_space<vmem>>, %arg7: memref<2x8x256xf32, #tpu.memory_space<vmem>>, %arg8: memref<2x32x256xf32, #tpu.memory_space<vmem>>, %arg9: memref<2x8x256xf32, #tpu.memory_space<vmem>>, %arg10: memref<32x1xf32, #tpu.memory_space<vmem>>, %arg11: memref<32x1xf32, #tpu.memory_space<vmem>>, %arg12: memref<8x1xf32, #tpu.memory_space<vmem>>, %arg13: memref<8x1xf32, #tpu.memory_space<vmem>>) attributes {dimension_semantics = [#tpu.dimension_semantics<arbitrary>, #tpu.dimension_semantics<arbitrary>], iteration_bounds = array<i64: 2, 2>, scalar_prefetch = 0 : i64, scratch_operands = 6 : i64, tpu.core_type = #tpu.core_type<tc>, window_params = [{transform_indices = @transform_0, window_bounds = array<i64: 1, 4, 256>}, {pipeline_mode = #tpu.pipeline_mode<synchronous>, transform_indices = @transform_1, window_bounds = array<i64: 32, 4>}, {pipeline_mode = #tpu.pipeline_mode<synchronous>, transform_indices = @transform_2, window_bounds = array<i64: 32, 2>}, {pipeline_mode = #tpu.pipeline_mode<synchronous>, transform_indices = @transform_3, window_bounds = array<i64: 8, 32>}, {pipeline_mode = #tpu.pipeline_mode<synchronous>, transform_indices = @transform_4, window_bounds = array<i64: 8, 2>}, {pipeline_mode = #tpu.pipeline_mode<synchronous>, transform_indices = @transform_5, window_bounds = array<i64: 2, 8, 256>}]} {
    %c0_i32 = arith.constant 0 : i32
    %0 = arith.cmpi eq, %arg0, %c0_i32 : i32
    %1 = arith.extui %0 : i1 to i32
    %c0_i32_0 = arith.constant 0 : i32
    %2 = arith.cmpi ne, %1, %c0_i32_0 : i32
    scf.if %2 {
      %c0_i32_2 = arith.constant 0 : i32
      %6 = arith.cmpi eq, %arg1, %c0_i32_2 : i32
      %7 = arith.extui %6 : i1 to i32
      %c0_i32_3 = arith.constant 0 : i32
      %8 = arith.cmpi ne, %7, %c0_i32_3 : i32
      scf.if %8 {
        %cst_34 = arith.constant 0.000000e+00 : f32
        %53 = vector.broadcast %cst_34 : f32 to vector<32x1xf32>
        %c0_35 = arith.constant 0 : index
        %c0_36 = arith.constant 0 : index
        %54 = vector.load %arg10[%c0_35, %c0_36] : memref<32x1xf32, #tpu.memory_space<vmem>>, vector<32x1xf32>
        tpu.vector_store %arg10[%c0_35, %c0_36], %53 {strides = array<i32>} : memref<32x1xf32, #tpu.memory_space<vmem>>, vector<32x1xf32>,
        %cst_37 = arith.constant 0.000000e+00 : f32
        %55 = vector.broadcast %cst_37 : f32 to vector<32x1xf32>
        %c0_38 = arith.constant 0 : index
        %c0_39 = arith.constant 0 : index
        %56 = vector.load %arg11[%c0_38, %c0_39] : memref<32x1xf32, #tpu.memory_space<vmem>>, vector<32x1xf32>
        tpu.vector_store %arg11[%c0_38, %c0_39], %55 {strides = array<i32>} : memref<32x1xf32, #tpu.memory_space<vmem>>, vector<32x1xf32>,
      } else {
      }
      %c0 = arith.constant 0 : index
      %c0_4 = arith.constant 0 : index
      %9 = vector.load %arg3[%c0, %c0_4] : memref<32x4xf32, #tpu.memory_space<vmem>>, vector<32x4xf32>
      %c0_5 = arith.constant 0 : index
      %c0_6 = arith.constant 0 : index
      %c0_7 = arith.constant 0 : index
      %10 = vector.load %arg2[%c0_5, %c0_6, %c0_7] : memref<1x4x256xf32, #tpu.memory_space<vmem>>, vector<1x4x256xf32>
      %11 = vector.shape_cast %10 : vector<1x4x256xf32> to vector<4x256xf32>
      %cst = arith.constant dense<0.000000e+00> : vector<32x256xf32>
      %12 = tpu.matmul %9, %11, %cst {dimension_numbers = #tpu.dot_dimension_numbers<[1], [0], [0], [1], [0, 0, 1, 1], [], []>} : vector<32x4xf32>, vector<4x256xf32>, vector<32x256xf32> -> vector<32x256xf32>
      %13 = arith.index_cast %arg1 : i32 to index
      %c0_8 = arith.constant 0 : index
      %c0_9 = arith.constant 0 : index
      %14 = vector.load %arg8[%13, %c0_8, %c0_9] : memref<2x32x256xf32, #tpu.memory_space<vmem>>, vector<1x32x256xf32>
      %15 = vector.shape_cast %14 : vector<1x32x256xf32> to vector<32x256xf32>
      %16 = vector.shape_cast %12 : vector<32x256xf32> to vector<1x32x256xf32>
      tpu.vector_store %arg8[%13, %c0_8, %c0_9], %16 {strides = array<i32>} : memref<2x32x256xf32, #tpu.memory_space<vmem>>, vector<1x32x256xf32>,
      %c0_10 = arith.constant 0 : index
      %c0_11 = arith.constant 0 : index
      %c0_12 = arith.constant 0 : index
      %17 = vector.load %arg2[%c0_10, %c0_11, %c0_12] : memref<1x4x256xf32, #tpu.memory_space<vmem>>, vector<1x4x256xf32>
      %18 = vector.shape_cast %17 : vector<1x4x256xf32> to vector<4x256xf32>
      %cst_13 = arith.constant dense<0.000000e+00> : vector<4xf32>
      %19 = vector.multi_reduction <add>, %18, %cst_13 [1] : vector<4x256xf32> to vector<4xf32>
      %20 = vector.shape_cast %19 : vector<4xf32> to vector<4x1xf32>
      %cst_14 = arith.constant 3.906250e-03 : f32
      %21 = vector.broadcast %cst_14 : f32 to vector<4x1xf32>
      %22 = arith.mulf %20, %21 : vector<4x1xf32>
      %c0_15 = arith.constant 0 : index
      %c0_16 = arith.constant 0 : index
      %23 = vector.load %arg3[%c0_15, %c0_16] : memref<32x4xf32, #tpu.memory_space<vmem>>, vector<32x4xf32>
      %cst_17 = arith.constant dense<0.000000e+00> : vector<32x1xf32>
      %24 = tpu.matmul %23, %22, %cst_17 {dimension_numbers = #tpu.dot_dimension_numbers<[1], [0], [0], [1], [0, 0, 1, 1], [], []>} : vector<32x4xf32>, vector<4x1xf32>, vector<32x1xf32> -> vector<32x1xf32>
      %25 = vector.broadcast %24 : vector<32x1xf32> to vector<32x256xf32>
      %26 = arith.subf %12, %25 : vector<32x256xf32>
      %27 = arith.mulf %26, %26 : vector<32x256xf32>
      %cst_18 = arith.constant dense<0.000000e+00> : vector<32xf32>
      %28 = vector.multi_reduction <add>, %27, %cst_18 [1] : vector<32x256xf32> to vector<32xf32>
      %29 = vector.shape_cast %28 : vector<32xf32> to vector<32x1xf32>
      %c256_i32 = arith.constant 256 : i32
      %30 = arith.muli %arg1, %c256_i32 : i32
      %31 = arith.sitofp %30 : i32 to f32
      %cst_19 = arith.constant 2.560000e+02 : f32
      %32 = arith.addf %31, %cst_19 : f32
      %c0_20 = arith.constant 0 : index
      %c0_21 = arith.constant 0 : index
      %33 = vector.load %arg10[%c0_20, %c0_21] : memref<32x1xf32, #tpu.memory_space<vmem>>, vector<32x1xf32>
      %34 = arith.subf %24, %33 : vector<32x1xf32>
      %c0_22 = arith.constant 0 : index
      %c0_23 = arith.constant 0 : index
      %35 = vector.load %arg10[%c0_22, %c0_23] : memref<32x1xf32, #tpu.memory_space<vmem>>, vector<32x1xf32>
      %cst_24 = arith.constant 2.560000e+02 : f32
      %36 = arith.divf %cst_24, %32 : f32
      %37 = vector.broadcast %36 : f32 to vector<32x1xf32>
      %38 = arith.mulf %34, %37 : vector<32x1xf32>
      %39 = arith.addf %35, %38 : vector<32x1xf32>
      %c0_25 = arith.constant 0 : index
      %c0_26 = arith.constant 0 : index
      %40 = vector.load %arg11[%c0_25, %c0_26] : memref<32x1xf32, #tpu.memory_space<vmem>>, vector<32x1xf32>
      %41 = arith.addf %40, %29 : vector<32x1xf32>
      %42 = arith.mulf %34, %34 : vector<32x1xf32>
      %cst_27 = arith.constant 2.560000e+02 : f32
      %43 = arith.mulf %31, %cst_27 : f32
      %44 = arith.divf %43, %32 : f32
      %45 = vector.broadcast %44 : f32 to vector<32x1xf32>
      %46 = arith.mulf %42, %45 : vector<32x1xf32>
      %47 = arith.addf %41, %46 : vector<32x1xf32>
      %c0_28 = arith.constant 0 : index
      %c0_29 = arith.constant 0 : index
      %48 = vector.load %arg10[%c0_28, %c0_29] : memref<32x1xf32, #tpu.memory_space<vmem>>, vector<32x1xf32>
      tpu.vector_store %arg10[%c0_28, %c0_29], %39 {strides = array<i32>} : memref<32x1xf32, #tpu.memory_space<vmem>>, vector<32x1xf32>,
      %c0_30 = arith.constant 0 : index
      %c0_31 = arith.constant 0 : index
      %49 = vector.load %arg11[%c0_30, %c0_31] : memref<32x1xf32, #tpu.memory_space<vmem>>, vector<32x1xf32>
      tpu.vector_store %arg11[%c0_30, %c0_31], %47 {strides = array<i32>} : memref<32x1xf32, #tpu.memory_space<vmem>>, vector<32x1xf32>,
      %c1_i32_32 = arith.constant 1 : i32
      %50 = arith.cmpi eq, %arg1, %c1_i32_32 : i32
      %51 = arith.extui %50 : i1 to i32
      %c0_i32_33 = arith.constant 0 : i32
      %52 = arith.cmpi ne, %51, %c0_i32_33 : i32
      scf.if %52 {
        %53 = vector.broadcast %32 : f32 to vector<32x1xf32>
        %54 = arith.divf %47, %53 : vector<32x1xf32>
        %cst_34 = arith.constant 9.99999974E-6 : f32
        %55 = vector.broadcast %cst_34 : f32 to vector<32x1xf32>
        %56 = arith.addf %54, %55 : vector<32x1xf32>
        %57 = math.rsqrt %56 : vector<32x1xf32>
        %c0_35 = arith.constant 0 : index
        %c0_36 = arith.constant 0 : index
        %58 = vector.load %arg4[%c0_35, %c0_36] : memref<32x2xf32, #tpu.memory_space<vmem>>, vector<32x1xf32>
        %59 = arith.mulf %57, %58 : vector<32x1xf32>
        %c0_37 = arith.constant 0 : index
        %c1 = arith.constant 1 : index
        %60 = vector.load %arg4[%c0_37, %c1] : memref<32x2xf32, #tpu.memory_space<vmem>>, vector<32x1xf32>
        %61 = arith.mulf %39, %59 : vector<32x1xf32>
        %62 = arith.subf %60, %61 : vector<32x1xf32>
        %c0_38 = arith.constant 0 : index
        %c0_39 = arith.constant 0 : index
        %63 = vector.load %arg10[%c0_38, %c0_39] : memref<32x1xf32, #tpu.memory_space<vmem>>, vector<32x1xf32>
        tpu.vector_store %arg10[%c0_38, %c0_39], %59 {strides = array<i32>} : memref<32x1xf32, #tpu.memory_space<vmem>>, vector<32x1xf32>,
        %c0_40 = arith.constant 0 : index
        %c0_41 = arith.constant 0 : index
        %64 = vector.load %arg11[%c0_40, %c0_41] : memref<32x1xf32, #tpu.memory_space<vmem>>, vector<32x1xf32>
        tpu.vector_store %arg11[%c0_40, %c0_41], %62 {strides = array<i32>} : memref<32x1xf32, #tpu.memory_space<vmem>>, vector<32x1xf32>,
      } else {
      }
    } else {
    }
    %c1_i32 = arith.constant 1 : i32
    %3 = arith.cmpi eq, %arg0, %c1_i32 : i32
    %4 = arith.extui %3 : i1 to i32
    %c0_i32_1 = arith.constant 0 : i32
    %5 = arith.cmpi ne, %4, %c0_i32_1 : i32
    scf.if %5 {
      %c0_i32_2 = arith.constant 0 : i32
      %6 = arith.cmpi eq, %arg1, %c0_i32_2 : i32
      %7 = arith.extui %6 : i1 to i32
      %c0_i32_3 = arith.constant 0 : i32
      %8 = arith.cmpi ne, %7, %c0_i32_3 : i32
      scf.if %8 {
        %cst_32 = arith.constant 0.000000e+00 : f32
        %58 = vector.broadcast %cst_32 : f32 to vector<8x1xf32>
        %c0_33 = arith.constant 0 : index
        %c0_34 = arith.constant 0 : index
        %59 = vector.load %arg12[%c0_33, %c0_34] : memref<8x1xf32, #tpu.memory_space<vmem>>, vector<8x1xf32>
        tpu.vector_store %arg12[%c0_33, %c0_34], %58 {strides = array<i32>} : memref<8x1xf32, #tpu.memory_space<vmem>>, vector<8x1xf32>,
        %cst_35 = arith.constant 0.000000e+00 : f32
        %60 = vector.broadcast %cst_35 : f32 to vector<8x1xf32>
        %c0_36 = arith.constant 0 : index
        %c0_37 = arith.constant 0 : index
        %61 = vector.load %arg13[%c0_36, %c0_37] : memref<8x1xf32, #tpu.memory_space<vmem>>, vector<8x1xf32>
        tpu.vector_store %arg13[%c0_36, %c0_37], %60 {strides = array<i32>} : memref<8x1xf32, #tpu.memory_space<vmem>>, vector<8x1xf32>,
      } else {
      }
      %9 = arith.index_cast %arg1 : i32 to index
      %c0 = arith.constant 0 : index
      %c0_4 = arith.constant 0 : index
      %10 = vector.load %arg8[%9, %c0, %c0_4] : memref<2x32x256xf32, #tpu.memory_space<vmem>>, vector<1x32x256xf32>
      %11 = vector.shape_cast %10 : vector<1x32x256xf32> to vector<32x256xf32>
      %c0_5 = arith.constant 0 : index
      %c0_6 = arith.constant 0 : index
      %12 = vector.load %arg10[%c0_5, %c0_6] : memref<32x1xf32, #tpu.memory_space<vmem>>, vector<32x1xf32>
      %13 = vector.broadcast %12 : vector<32x1xf32> to vector<32x256xf32>
      %14 = arith.mulf %11, %13 : vector<32x256xf32>
      %c0_7 = arith.constant 0 : index
      %c0_8 = arith.constant 0 : index
      %15 = vector.load %arg11[%c0_7, %c0_8] : memref<32x1xf32, #tpu.memory_space<vmem>>, vector<32x1xf32>
      %16 = vector.broadcast %15 : vector<32x1xf32> to vector<32x256xf32>
      %17 = arith.addf %14, %16 : vector<32x256xf32>
      %cst = arith.constant 0.000000e+00 : f32
      %18 = vector.broadcast %cst : f32 to vector<32x256xf32>
      %19 = arith.maximumf %17, %18 : vector<32x256xf32>
      %c0_9 = arith.constant 0 : index
      %c0_10 = arith.constant 0 : index
      %20 = vector.load %arg5[%c0_9, %c0_10] : memref<8x32xf32, #tpu.memory_space<vmem>>, vector<8x32xf32>
      %cst_11 = arith.constant dense<0.000000e+00> : vector<8x256xf32>
      %21 = tpu.matmul %20, %19, %cst_11 {dimension_numbers = #tpu.dot_dimension_numbers<[1], [0], [0], [1], [0, 0, 1, 1], [], []>} : vector<8x32xf32>, vector<32x256xf32>, vector<8x256xf32> -> vector<8x256xf32>
      %22 = arith.index_cast %arg1 : i32 to index
      %c0_12 = arith.constant 0 : index
      %c0_13 = arith.constant 0 : index
      %23 = vector.load %arg9[%22, %c0_12, %c0_13] : memref<2x8x256xf32, #tpu.memory_space<vmem>>, vector<1x8x256xf32>
      %24 = vector.shape_cast %23 : vector<1x8x256xf32> to vector<8x256xf32>
      %25 = vector.shape_cast %21 : vector<8x256xf32> to vector<1x8x256xf32>
      tpu.vector_store %arg9[%22, %c0_12, %c0_13], %25 {strides = array<i32>} : memref<2x8x256xf32, #tpu.memory_space<vmem>>, vector<1x8x256xf32>,
      %cst_14 = arith.constant dense<0.000000e+00> : vector<8xf32>
      %26 = vector.multi_reduction <add>, %21, %cst_14 [1] : vector<8x256xf32> to vector<8xf32>
      %27 = vector.shape_cast %26 : vector<8xf32> to vector<8x1xf32>
      %cst_15 = arith.constant 3.906250e-03 : f32
      %28 = vector.broadcast %cst_15 : f32 to vector<8x1xf32>
      %29 = arith.mulf %27, %28 : vector<8x1xf32>
      %30 = vector.broadcast %29 : vector<8x1xf32> to vector<8x256xf32>
      %31 = arith.subf %21, %30 : vector<8x256xf32>
      %32 = arith.mulf %31, %31 : vector<8x256xf32>
      %cst_16 = arith.constant dense<0.000000e+00> : vector<8xf32>
      %33 = vector.multi_reduction <add>, %32, %cst_16 [1] : vector<8x256xf32> to vector<8xf32>
      %34 = vector.shape_cast %33 : vector<8xf32> to vector<8x1xf32>
      %c256_i32 = arith.constant 256 : i32
      %35 = arith.muli %arg1, %c256_i32 : i32
      %36 = arith.sitofp %35 : i32 to f32
      %cst_17 = arith.constant 2.560000e+02 : f32
      %37 = arith.addf %36, %cst_17 : f32
      %c0_18 = arith.constant 0 : index
      %c0_19 = arith.constant 0 : index
      %38 = vector.load %arg12[%c0_18, %c0_19] : memref<8x1xf32, #tpu.memory_space<vmem>>, vector<8x1xf32>
      %39 = arith.subf %29, %38 : vector<8x1xf32>
      %c0_20 = arith.constant 0 : index
      %c0_21 = arith.constant 0 : index
      %40 = vector.load %arg12[%c0_20, %c0_21] : memref<8x1xf32, #tpu.memory_space<vmem>>, vector<8x1xf32>
      %cst_22 = arith.constant 2.560000e+02 : f32
      %41 = arith.divf %cst_22, %37 : f32
      %42 = vector.broadcast %41 : f32 to vector<8x1xf32>
      %43 = arith.mulf %39, %42 : vector<8x1xf32>
      %44 = arith.addf %40, %43 : vector<8x1xf32>
      %c0_23 = arith.constant 0 : index
      %c0_24 = arith.constant 0 : index
      %45 = vector.load %arg13[%c0_23, %c0_24] : memref<8x1xf32, #tpu.memory_space<vmem>>, vector<8x1xf32>
      %46 = arith.addf %45, %34 : vector<8x1xf32>
      %47 = arith.mulf %39, %39 : vector<8x1xf32>
      %cst_25 = arith.constant 2.560000e+02 : f32
      %48 = arith.mulf %36, %cst_25 : f32
      %49 = arith.divf %48, %37 : f32
      %50 = vector.broadcast %49 : f32 to vector<8x1xf32>
      %51 = arith.mulf %47, %50 : vector<8x1xf32>
      %52 = arith.addf %46, %51 : vector<8x1xf32>
      %c0_26 = arith.constant 0 : index
      %c0_27 = arith.constant 0 : index
      %53 = vector.load %arg12[%c0_26, %c0_27] : memref<8x1xf32, #tpu.memory_space<vmem>>, vector<8x1xf32>
      tpu.vector_store %arg12[%c0_26, %c0_27], %44 {strides = array<i32>} : memref<8x1xf32, #tpu.memory_space<vmem>>, vector<8x1xf32>,
      %c0_28 = arith.constant 0 : index
      %c0_29 = arith.constant 0 : index
      %54 = vector.load %arg13[%c0_28, %c0_29] : memref<8x1xf32, #tpu.memory_space<vmem>>, vector<8x1xf32>
      tpu.vector_store %arg13[%c0_28, %c0_29], %52 {strides = array<i32>} : memref<8x1xf32, #tpu.memory_space<vmem>>, vector<8x1xf32>,
      %c1_i32_30 = arith.constant 1 : i32
      %55 = arith.cmpi eq, %arg1, %c1_i32_30 : i32
      %56 = arith.extui %55 : i1 to i32
      %c0_i32_31 = arith.constant 0 : i32
      %57 = arith.cmpi ne, %56, %c0_i32_31 : i32
      scf.if %57 {
        %58 = vector.broadcast %37 : f32 to vector<8x1xf32>
        %59 = arith.divf %52, %58 : vector<8x1xf32>
        %cst_32 = arith.constant 9.99999974E-6 : f32
        %60 = vector.broadcast %cst_32 : f32 to vector<8x1xf32>
        %61 = arith.addf %59, %60 : vector<8x1xf32>
        %62 = math.rsqrt %61 : vector<8x1xf32>
        %c0_33 = arith.constant 0 : index
        %c0_34 = arith.constant 0 : index
        %63 = vector.load %arg6[%c0_33, %c0_34] : memref<8x2xf32, #tpu.memory_space<vmem>>, vector<8x1xf32>
        %64 = arith.mulf %62, %63 : vector<8x1xf32>
        %c0_35 = arith.constant 0 : index
        %c1 = arith.constant 1 : index
        %65 = vector.load %arg6[%c0_35, %c1] : memref<8x2xf32, #tpu.memory_space<vmem>>, vector<8x1xf32>
        %66 = arith.mulf %44, %64 : vector<8x1xf32>
        %67 = arith.subf %65, %66 : vector<8x1xf32>
        %c0_36 = arith.constant 0 : index
        %c0_37 = arith.constant 0 : index
        %c0_38 = arith.constant 0 : index
        %68 = vector.load %arg9[%c0_36, %c0_37, %c0_38] : memref<2x8x256xf32, #tpu.memory_space<vmem>>, vector<1x8x256xf32>
        %69 = vector.shape_cast %68 : vector<1x8x256xf32> to vector<8x256xf32>
        %70 = vector.broadcast %64 : vector<8x1xf32> to vector<8x256xf32>
        %71 = arith.mulf %69, %70 : vector<8x256xf32>
        %72 = vector.broadcast %67 : vector<8x1xf32> to vector<8x256xf32>
        %73 = arith.addf %71, %72 : vector<8x256xf32>
        %c0_39 = arith.constant 0 : index
        %c0_40 = arith.constant 0 : index
        %c0_41 = arith.constant 0 : index
        %74 = vector.load %arg7[%c0_39, %c0_40, %c0_41] : memref<2x8x256xf32, #tpu.memory_space<vmem>>, vector<1x8x256xf32>
        %75 = vector.shape_cast %74 : vector<1x8x256xf32> to vector<8x256xf32>
        %76 = vector.shape_cast %73 : vector<8x256xf32> to vector<1x8x256xf32>
        tpu.vector_store %arg7[%c0_39, %c0_40, %c0_41], %76 {strides = array<i32>} : memref<2x8x256xf32, #tpu.memory_space<vmem>>, vector<1x8x256xf32>,
        %c1_42 = arith.constant 1 : index
        %c0_43 = arith.constant 0 : index
        %c0_44 = arith.constant 0 : index
        %77 = vector.load %arg9[%c1_42, %c0_43, %c0_44] : memref<2x8x256xf32, #tpu.memory_space<vmem>>, vector<1x8x256xf32>
        %78 = vector.shape_cast %77 : vector<1x8x256xf32> to vector<8x256xf32>
        %79 = vector.broadcast %64 : vector<8x1xf32> to vector<8x256xf32>
        %80 = arith.mulf %78, %79 : vector<8x256xf32>
        %81 = vector.broadcast %67 : vector<8x1xf32> to vector<8x256xf32>
        %82 = arith.addf %80, %81 : vector<8x256xf32>
        %c1_45 = arith.constant 1 : index
        %c0_46 = arith.constant 0 : index
        %c0_47 = arith.constant 0 : index
        %83 = vector.load %arg7[%c1_45, %c0_46, %c0_47] : memref<2x8x256xf32, #tpu.memory_space<vmem>>, vector<1x8x256xf32>
        %84 = vector.shape_cast %83 : vector<1x8x256xf32> to vector<8x256xf32>
        %85 = vector.shape_cast %82 : vector<8x256xf32> to vector<1x8x256xf32>
        tpu.vector_store %arg7[%c1_45, %c0_46, %c0_47], %85 {strides = array<i32>} : memref<2x8x256xf32, #tpu.memory_space<vmem>>, vector<1x8x256xf32>,
      } else {
      }
    } else {
    }
    return
  }
  func.func @transform_0(%arg0: i32, %arg1: i32) -> (i32, i32, i32) {
    %c0_i32 = arith.constant 0 : i32
    %c0_i32_0 = arith.constant 0 : i32
    %c0_i32_1 = arith.constant 0 : i32
    return %arg1, %c0_i32, %c0_i32_0 : i32, i32, i32
  }
  func.func @transform_1(%arg0: i32, %arg1: i32) -> (i32, i32) {
    %c0_i32 = arith.constant 0 : i32
    %c0_i32_0 = arith.constant 0 : i32
    %c0_i32_1 = arith.constant 0 : i32
    return %c0_i32, %c0_i32_0 : i32, i32
  }
  func.func @transform_2(%arg0: i32, %arg1: i32) -> (i32, i32) {
    %c0_i32 = arith.constant 0 : i32
    %c0_i32_0 = arith.constant 0 : i32
    %c0_i32_1 = arith.constant 0 : i32
    return %c0_i32, %c0_i32_0 : i32, i32
  }
  func.func @transform_3(%arg0: i32, %arg1: i32) -> (i32, i32) {
    %c0_i32 = arith.constant 0 : i32
    %c0_i32_0 = arith.constant 0 : i32
    %c0_i32_1 = arith.constant 0 : i32
    return %c0_i32, %c0_i32_0 : i32, i32
  }
  func.func @transform_4(%arg0: i32, %arg1: i32) -> (i32, i32) {
    %c0_i32 = arith.constant 0 : i32
    %c0_i32_0 = arith.constant 0 : i32
    %c0_i32_1 = arith.constant 0 : i32
    return %c0_i32, %c0_i32_0 : i32, i32
  }
  func.func @transform_5(%arg0: i32, %arg1: i32) -> (i32, i32, i32) {
    %c0_i32 = arith.constant 0 : i32
    %c0_i32_0 = arith.constant 0 : i32
    %c0_i32_1 = arith.constant 0 : i32
    %c0_i32_2 = arith.constant 0 : i32
    return %c0_i32, %c0_i32_0, %c0_i32_1 : i32, i32, i32
  }
}

</mosaic_0001>

<bundles_post_ra>
// kernel: tpu_custom_call.1
= control target key start
LH: loop header
LB: loop body
LE: loop exit
PB: predicated region body
PF: predicated region fallthrough
CT: control target
= control target key end

     0   :  { %10 = vsyncpa [#allocation9], 0  ;;  %s1242_s18 = smov 0   ;;  %s1244_s19 = smov 0   ;;  %s1433_s0 = inlined_call_operand.vmem [shape: f32[2,4,256], index: 0, kind: input, shape index: {}]   ;;  %s1434_s1 = inlined_call_operand.vmem [shape: f32[32,4], index: 1, kind: input, shape index: {}]   ;;  %s1435_s2 = inlined_call_operand.vmem [shape: f32[32,2], index: 2, kind: input, shape index: {}]   ;;  %s1436_s3 = inlined_call_operand.vmem [shape: f32[8,32], index: 3, kind: input, shape index: {}]   ;;  %s1437_s4 = inlined_call_operand.vmem [shape: f32[8,2], index: 4, kind: input, shape index: {}]   ;;  %s1438_s5 = inlined_call_operand.hbm [shape: f32[2,8,256], index: 5, kind: output, shape index: {}]  }
   0x1   :  { %s1246_s20 = smov 0   ;;  %s1248_s21 = smov 0  }
   0x2   :  { %s1250_s22 = smov 0  }
   0x3 LB: > { %s995_s23 = sadd.s32 4294967295, %s1198_s22   ;;  %s25_s24 = sadd.s32 1, %s1190_s20  ;;  %s1198_s22 = sphi %s1250_s22, %s16_s22   ;;  %s1194_s21 = sphi %s1248_s21, %s1444_s21   ;;  %s1190_s20 = sphi %s1246_s20, %s1443_s20   ;;  %s1186_s19 = sphi %s1244_s19, %s1442_s19   ;;  %s1182_s18 = sphi %s1242_s18, %s1441_s18  }
   0x4   : > { %p26_p0 = scmp.ge.s32.totalorder %s25_s24, 2  ;;  %s28_s25 = sadd.s32 1, %s1194_s21 }
   0x5   : > { %p998_p1 = scmp.ge.s32.totalorder %s1198_s22, 1  ;;  %p195_p2 = scmp.lt.s32.totalorder %s1198_s22, 5 }
   0x6   : > { %s1446_s24 = smov (%p26_p0, %s25_s24), 0  ;;  %s1448_s25 = smov (!%p26_p0, %s28_s25), %s1194_s21 }
   0x7   : > { %p196_p3 = pnand %p998_p1, %p195_p2  ;;  %p30_p4 = scmp.ge.s32.totalorder %s1448_s25, 2 }
   0x8   : > { %p218_p5 = scmp.lt.s32.totalorder (!%p196_p3), %s1182_s18, 1  ;;  %p1001_p6 = scmp.ne.s32.totalorder (!%p196_p3), %s1186_s19, 0 }
   0x9   : > { %s1450_s25 = smov (%p30_p4, %s1448_s25), 0  ;;  %199 = sbr.rel (%p196_p3) target bundleno = 1620 (0x654), region = 40 }
   0xe   : > { %s219_s26 = scalar_select %p218_p5, %s1182_s18, 1 }
   0xf   : > { %226 = sbr.rel (%p1001_p6) target bundleno = 822 (0x336), region = 44  ;;  %p1002_p7 = scmp.ne.s32.totalorder (!%p1001_p6), %s1182_s18, 0 }
  0x10   : > { %s1036_s27 = sshll.u32 %s219_s26, 3 }
  0x11   : > { %s222_s30 = scalar_lea.vmem %s1433_s0, %s1036_s27 }
  0x14   : > { %230 = sbr.rel (%p1002_p7) target bundleno = 34 (0x22), region = 48 }
  0x19   : > { %vm231_vm0 = vcmask 7168   ;;  %v1200_v0 = vmov 0.0  }
  0x1a   : > { %232 = vst.msk [vmem:[#allocation4] sm:$0xff] %vm231_vm0, %v1200_v0 }
  0x1b   : > { %233 = vst.msk [vmem:[#allocation4 + $0x8] sm:$0xff] %vm231_vm0, %v1200_v0 }
  0x1c   : > { %234 = vst.msk [vmem:[#allocation4 + $0x10] sm:$0xff] %vm231_vm0, %v1200_v0 }
  0x1d   : > { %235 = vst.msk [vmem:[#allocation4 + $0x18] sm:$0xff] %vm231_vm0, %v1200_v0 }
  0x1e   : > { %236 = vst.msk [vmem:[#allocation5] sm:$0xff] %vm231_vm0, %v1200_v0 }
  0x1f   : > { %237 = vst.msk [vmem:[#allocation5 + $0x8] sm:$0xff] %vm231_vm0, %v1200_v0 }
  0x20   : > { %238 = vst.msk [vmem:[#allocation5 + $0x10] sm:$0xff] %vm231_vm0, %v1200_v0 }
  0x21   : > { %239 = vst.msk [vmem:[#allocation5 + $0x18] sm:$0xff] %vm231_vm0, %v1200_v0 }
  0x22 PF: > { %v244_v1 = vld [vmem:[%s222_s30] sm:$0xff]  ;;  %vm262_vm1 = vcmask 1043456   ;;  %vm249_vm2 = vcmask 31744   ;;  %v350_v10 = vld [vmem:[%s1434_s1 + $0x8] sm:$0xff]  ;;  %s1020_s10 = sshll.u32 %s1182_s18, 8  ;;  %v351_v11 = vld [vmem:[%s1434_s1 + $0x10] sm:$0xff] }
  0x23   : > { %246 = vst [vmem:[#allocation1] ss:$2 sm:$0xff] %v244_v1  ;;  %v240_v2 = vld [vmem:[%s1434_s1] sm:$0xff]  ;;  %s1304_s13 = scvt.s32.f32 %s1020_s10  ;;  %v352_v12 = vld [vmem:[%s1434_s1 + $0x18] sm:$0xff]  ;;  %v1201_v14 = vmov 0   ;;  %s1037_s17 = sshll.u32 %s1182_s18, 6 }
  0x24   : > { %1105 = vset.pattern.permute.xlu0 %v1201_v14  ;;  %1106 = vset.pattern.permute.xlu1 %v1201_v14  ;;  %s1317_s26 = scalar_lea.vmem [#allocation2], %s1037_s17  ;;  %v448_v31 = vld [vmem:[#allocation4] sm:$0xff]  ;;  %vm521_vm7 = vcmask 7168   ;;  %v449_v38 = vld [vmem:[#allocation4 + $0x8] sm:$0xff]  ;;  %v450_v49 = vld [vmem:[#allocation4 + $0x10] sm:$0xff]  ;;  %p1021_p8 = scmp.ne.s32.totalorder %s1182_s18, 1 }
  0x25   : > { %s447_s14 = sadd.f32 256.0, %s1304_s13  ;;  %1107 = vset.pattern.permute.xlu2 %v1201_v14  ;;  %s494_s28 = smul.f32 256.0, %s1304_s13  ;;  %v451_v56 = vld [vmem:[#allocation4 + $0x18] sm:$0xff] }
  0x26   : > { %s1203_s15 = smov (!%p1021_p8), 127  }
  0x27   : > { %v456_v13 = vstv %s447_s14  ;;  %s1202_s14 = smov (!%p1021_p8), 1  }
  0x28   : > { %1108 = vrcp.f32 %v456_v13  ;;  %v468_v17 = vand.u32 2147483648, %v456_v13  ;;  %vm462_vm3 = vweird.f32 %v456_v13  ;;  %v466_v19 = vand.u32 2147483647, %v456_v13 }
  0x2a   : > { %v247_v3 = vld.sshfl [vmem:[#allocation1] sm:$0xff pattern:$0x75316420]  ;;  %v248_v4 = vld.sshfl [vmem:[#allocation1 + $0x8] sm:$0xff pattern:$0x75316420] }
  0x2b   : > { %338 = vst [vmem:[#allocation1] ss:$2 sm:$0xff] %v244_v1  ;;  %1003 = vmatpush.msk.msra.mxu0 %vm262_vm1, %v247_v3  ;;  %1040 = vmatpush.msk.msra.mxu3 %vm262_vm1, %v247_v3  ;;  %v469_v24 = vor.u32 1.1754944e-38, %v468_v17  ;;  %vm467_vm6 = vcmp.eq.f32.partialorder %v466_v19, 8.507059e+37 }
  0x2c   : > { %1004 = vmatmul.msk.f32.vlgmr.msra.gmra.mxu0 %vm249_vm2, %v240_v2  ;;  %1041 = vmatpush.msk.msra.mxu1 %vm262_vm1, %v248_v4 }
  0x2d   : > { %1008 = vmatpush.msk.msrb.mxu0 %vm262_vm1, %v248_v4  ;;  %1005 = vmatmul.msk.f32.vlgmr.msra.gmra.mxu3 %vm249_vm2, %v350_v10 }
  0x2e   : > { %1010 = vmatmul.msk.f32.vlgmr.msra.gmra.mxu1 %vm249_vm2, %v350_v10  ;;  %v1109_v15 = vpop.eup %1108 }
  0x2f   : > { %v458_v16 = vmul.f32 %v1109_v15, %v456_v13  ;;  %vm463_vm4 = vweird.f32 %v1109_v15 }
  0x30   : > { %vm464_vm5 = vmor %vm462_vm3, %vm463_vm4 }
  0x31   : > { %v459_v18 = vsub.f32 1.0, %v458_v16 }
  0x32   : > { %v339_v5 = vld.sshfl [vmem:[#allocation1] sm:$0xff pattern:$0x75316420]  ;;  %v340_v6 = vld.sshfl [vmem:[#allocation1 + $0x8] sm:$0xff pattern:$0x75316420] }
  0x33   : > { %v343_v7 = vsel %vm262_vm1, %v339_v5, 0.0  ;;  %v344_v8 = vsel %vm262_vm1, %v340_v6, 0.0  ;;  %v460_v21 = vmul.f32 %v1109_v15, %v459_v18 }
  0x34   : > { %v345_v9 = vadd.f32 %v344_v8, %v343_v7  ;;  %1009 = vmatmul.msk.f32.vlgmr.msrb.gmra.mxu0 %vm249_vm2, %v240_v2 }
  0x35   : > { %1006 = vmatmul.msk.f32.gmra.mxu3 %vm249_vm2, %v351_v11  ;;  %v461_v25 = vadd.f32 %v1109_v15, %v460_v21 }
  0x36   : > { %346 = vadd.xlane.f32.xlu0 %v345_v9  ;;  %1011 = vmatmul.msk.f32.gmra.mxu1 %vm249_vm2, %v351_v11 }
  0x37   : > { %v465_v26 = vsel %vm464_vm5, %v1109_v15, %v461_v25  ;;  %v482_v25 = vld [vmem:[#allocation5] sm:$0xff] }
  0x38   : > { %v1325_v27 = vsel %vm467_vm6, %v469_v24, %v465_v26 }
  0x39   : > { %1043 = vpush %v1325_v27 }
  0x3d   : > { %1007 = vmatmul.msk.f32.gmra.mxu3 %vm249_vm2, %v352_v12 }
  0x3e   : > { %1012 = vmatmul.msk.f32.gmra.mxu1 %vm249_vm2, %v352_v12 }
  0x6a   : > { %s1044_s27 = spop %1043 }
  0x6b   : > { %s472_s29 = smul.f32 256.0, %s1044_s27 }
  0x6c   : > { %s511_s30 = smul.f32 %s1044_s27, %s494_s28 }
  0x6d   : > { %v473_v33 = vstv %s472_s29 }
  0x6e   : > { %v512_v35 = vstv %s511_s30 }
  0xa9   : > { %v347_v20 = vpop.xlane.xlu0 %346  ;;  %v1315_v22 = vpop.f32.mrf.mxu0 }
  0xaa   : > { %v348_v23 = vmul.f32 0.00390625, %v347_v20  ;;  %328 = vst [vmem:[%s1317_s26] sm:$0xff] %v1315_v22 }
  0xab   : > { %v316_v30 = vpop.f32.mrf.mxu1 }
  0xac   : > { %1015 = vmatpush.msk.msra.mxu0 %vm262_vm1, %v348_v23  ;;  %1042 = vmatpush.msk.msra.mxu2 %vm262_vm1, %v348_v23  ;;  %331 = vst [vmem:[%s1317_s26 + $0x18] sm:$0xff] %v316_v30 }
  0xad   : > { %1016 = vmatmul.msk.f32.vlgmr.msra.gmra.mxu0 %vm249_vm2, %v240_v2  ;;  %1017 = vmatmul.msk.f32.vlgmr.msra.gmra.mxu2 %vm249_vm2, %v350_v10 }
  0xb0   : > { %v287_v29 = vpop.f32.mrf.mxu3 }
  0xb1   : > { %v313_v28 = vpop.f32.mrf.mxu0  ;;  %330 = vst [vmem:[%s1317_s26 + $0x10] sm:$0xff] %v287_v29 }
  0xb2   : > { %329 = vst [vmem:[%s1317_s26 + $0x8] sm:$0xff] %v313_v28 }
  0xb3   : > { %v319_v44 = vpop.f32.mrf.mxu1 }
  0xb4   : > { %333 = vst [vmem:[%s1317_s26 + $0x28] sm:$0xff] %v319_v44 }
  0xb5   : > { %1018 = vmatmul.msk.f32.gmra.mxu2 %vm249_vm2, %v351_v11 }
  0xb8   : > { %v290_v40 = vpop.f32.mrf.mxu3 }
  0xb9   : > { %332 = vst [vmem:[%s1317_s26 + $0x20] sm:$0xff] %v290_v40 }
  0xbb   : > { %v322_v0 = vpop.f32.mrf.mxu1 }
  0xbc   : > { %335 = vst [vmem:[%s1317_s26 + $0x38] sm:$0xff] %v322_v0 }
  0xbd   : > { %1019 = vmatmul.msk.f32.gmra.mxu2 %vm249_vm2, %v352_v12 }
  0xc0   : > { %v293_v63 = vpop.f32.mrf.mxu3 }
  0xc1   : > { %334 = vst [vmem:[%s1317_s26 + $0x30] sm:$0xff] %v293_v63 }
 0x12a   : > { %v385_v32 = vpop.f32.mrf.mxu0 }
 0x12b   : > { %v452_v34 = vsub.f32 %v385_v32, %v448_v31  ;;  %399 = vperm.xlu0 %1105, %v385_v32   ;;  %v485_v32 = vld [vmem:[#allocation5 + $0x18] sm:$0xff] }
 0x12d   : > { %v490_v36 = vmul.f32 %v452_v34, %v452_v34  ;;  %v474_v37 = vmul.f32 %v473_v33, %v452_v34 }
 0x12f   : > { %v1334_v39 = vadd.f32 %v474_v37, %v448_v31  ;;  %v1336_v41 = vmul.f32 %v512_v35, %v490_v36 }
 0x130   : > { %v388_v42 = vpop.f32.mrf.mxu2 }
 0x131   : > { %522 = vst.msk [vmem:[#allocation4] sm:$0xff] %vm521_vm7, %v1334_v39  ;;  %v453_v43 = vsub.f32 %v388_v42, %v449_v38  ;;  %404 = vperm.xlu1 %1106, %v388_v42  }
 0x133   : > { %v475_v45 = vmul.f32 %v473_v33, %v453_v43  ;;  %v491_v46 = vmul.f32 %v453_v43, %v453_v43 }
 0x135   : > { %v1342_v47 = vadd.f32 %v475_v45, %v449_v38  ;;  %v514_v48 = vmul.f32 %v512_v35, %v491_v46  ;;  %v484_v38 = vld [vmem:[#allocation5 + $0x10] sm:$0xff] }
 0x137   : > { %523 = vst.msk [vmem:[#allocation4 + $0x8] sm:$0xff] %vm521_vm7, %v1342_v47 }
 0x138   : > { %v391_v50 = vpop.f32.mrf.mxu2 }
 0x139   : > { %v454_v51 = vsub.f32 %v391_v50, %v450_v49  ;;  %409 = vperm.xlu1 %1106, %v391_v50  }
 0x13b   : > { %v476_v52 = vmul.f32 %v473_v33, %v454_v51  ;;  %v492_v53 = vmul.f32 %v454_v51, %v454_v51 }
 0x13d   : > { %v1346_v54 = vadd.f32 %v476_v52, %v450_v49  ;;  %v515_v55 = vmul.f32 %v512_v35, %v492_v53 }
 0x13f   : > { %524 = vst.msk [vmem:[#allocation4 + $0x10] sm:$0xff] %vm521_vm7, %v1346_v54 }
 0x140   : > { %v394_v57 = vpop.f32.mrf.mxu2 }
 0x141   : > { %v455_v58 = vsub.f32 %v394_v57, %v451_v56  ;;  %414 = vperm.xlu2 %1107, %v394_v57  }
 0x143   : > { %v477_v59 = vmul.f32 %v473_v33, %v455_v58  ;;  %v493_v60 = vmul.f32 %v455_v58, %v455_v58 }
 0x145   : > { %v1350_v61 = vadd.f32 %v477_v59, %v451_v56  ;;  %v516_v62 = vmul.f32 %v512_v35, %v493_v60 }
 0x147   : > { %525 = vst.msk [vmem:[#allocation4 + $0x18] sm:$0xff] %vm521_vm7, %v1350_v61 }
 0x19b   : > { %v415_v2 = vpop.permute.xlu2 %414 }
 0x19c   : > { %v423_v7 = vsub.f32 %v293_v63, %v415_v2  ;;  %v424_v8 = vsub.f32 %v322_v0, %v415_v2 }
 0x19d   : > { %v400_v1 = vpop.permute.xlu0 %399 }
 0x19e   : > { %v417_v3 = vsub.f32 %v1315_v22, %v400_v1  ;;  %v418_v4 = vsub.f32 %v313_v28, %v400_v1  ;;  %v431_v13 = vmul.f32 %v423_v7, %v423_v7  ;;  %v432_v14 = vmul.f32 %v424_v8, %v424_v8 }
 0x1a0   : > { %v425_v5 = vmul.f32 %v417_v3, %v417_v3  ;;  %v426_v6 = vmul.f32 %v418_v4, %v418_v4  ;;  %v442_v18 = vadd.f32 %v432_v14, %v431_v13 }
 0x1a2   : > { %v433_v9 = vadd.f32 %v426_v6, %v425_v5 }
 0x1a3   : > { %v405_v10 = vpop.permute.xlu1 %404 }
 0x1a4   : > { %v419_v11 = vsub.f32 %v287_v29, %v405_v10  ;;  %v420_v12 = vsub.f32 %v316_v30, %v405_v10  ;;  %434 = vadd.xlane.f32.xlu2 %v433_v9  ;;  %v483_v30 = vld [vmem:[#allocation5 + $0x8] sm:$0xff] }
 0x1a6   : > { %v427_v15 = vmul.f32 %v419_v11, %v419_v11  ;;  %v428_v16 = vmul.f32 %v420_v12, %v420_v12 }
 0x1a8   : > { %v436_v17 = vadd.f32 %v428_v16, %v427_v15 }
 0x1aa   : > { %437 = vadd.xlane.f32.xlu1 %v436_v17 }
 0x1ab   : > { %v410_v19 = vpop.permute.xlu1 %409 }
 0x1ac   : > { %v421_v20 = vsub.f32 %v290_v40, %v410_v19  ;;  %v422_v21 = vsub.f32 %v319_v44, %v410_v19  ;;  %443 = vadd.xlane.f32.xlu2 %v442_v18 }
 0x1ae   : > { %v429_v22 = vmul.f32 %v421_v20, %v421_v20  ;;  %v430_v23 = vmul.f32 %v422_v21, %v422_v21 }
 0x1b0   : > { %v439_v24 = vadd.f32 %v430_v23, %v429_v22 }
 0x1b2   : > { %440 = vadd.xlane.f32.xlu0 %v439_v24 }
 0x217   : > { %v435_v26 = vpop.xlane.xlu2 %434 }
 0x218   : > { %v486_v28 = vadd.f32 %v482_v25, %v435_v26 }
 0x21a   : > { %v517_v29 = vadd.f32 %v1336_v41, %v486_v28 }
 0x21c   : > { %526 = vst.msk [vmem:[#allocation5] sm:$0xff] %vm521_vm7, %v517_v29 }
 0x21d   : > { %v438_v31 = vpop.xlane.xlu1 %437 }
 0x21e   : > { %v487_v33 = vadd.f32 %v483_v30, %v438_v31 }
 0x21f   : > { %v444_v34 = vpop.xlane.xlu2 %443 }
 0x220   : > { %v518_v35 = vadd.f32 %v514_v48, %v487_v33  ;;  %v489_v36 = vadd.f32 %v485_v32, %v444_v34 }
 0x222   : > { %527 = vst.msk [vmem:[#allocation5 + $0x8] sm:$0xff] %vm521_vm7, %v518_v35  ;;  %v520_v37 = vadd.f32 %v516_v62, %v489_v36 }
 0x224   : > { %529 = vst.msk [vmem:[#allocation5 + $0x18] sm:$0xff] %vm521_vm7, %v520_v37 }
 0x225   : > { %v441_v40 = vpop.xlane.xlu0 %440 }
 0x226   : > { %v488_v42 = vadd.f32 %v484_v38, %v441_v40  ;;  %533 = sbr.rel (%p1021_p8) target bundleno = 822 (0x336), region = 52 }
 0x228   : > { %v519_v43 = vadd.f32 %v515_v55, %v488_v42 }
 0x22a   : > { %528 = vst.msk [vmem:[#allocation5 + $0x10] sm:$0xff] %vm521_vm7, %v519_v43 }
 0x22b   : > { %v551_v41 = vmul.f32 %v519_v43, %v1325_v27  ;;  %v552_v44 = vmul.f32 %v520_v37, %v1325_v27  ;;  %v549_v45 = vmul.f32 %v517_v29, %v1325_v27  ;;  %v550_v46 = vmul.f32 %v518_v35, %v1325_v27  ;;  %v599_v9 = vld [vmem:[%s1435_s2 + $0x10] sm:$0xff]  ;;  %v600_v12 = vld [vmem:[%s1435_s2 + $0x18] sm:$0xff]  ;;  %v597_v16 = vld [vmem:[%s1435_s2] sm:$0xff] }
 0x22c   : > { %v598_v20 = vld [vmem:[%s1435_s2 + $0x8] sm:$0xff] }
 0x22d   : > { %v555_v48 = vadd.f32 1e-05, %v551_v41  ;;  %v556_v49 = vadd.f32 1e-05, %v552_v44  ;;  %v553_v50 = vadd.f32 1e-05, %v549_v45 }
 0x22e   : > { %v554_v51 = vadd.f32 1e-05, %v550_v46 }
 0x22f   : > { %1110 = vrsqrt.f32 %v555_v48  ;;  %vm583_vm8 = vweird.f32 %v555_v48  ;;  %vm593_vm10 = vweird.f32 %v556_v49  ;;  %vm563_vm12 = vweird.f32 %v553_v50 }
 0x230   : > { %1112 = vrsqrt.f32 %v556_v49  ;;  %vm573_vm15 = vweird.f32 %v554_v51 }
 0x231   : > { %1114 = vrsqrt.f32 %v553_v50 }
 0x232   : > { %1116 = vrsqrt.f32 %v554_v51 }
 0x235   : > { %v1111_v52 = vpop.eup %1110 }
 0x236   : > { %v1113_v53 = vpop.eup %1112  ;;  %v578_v55 = vmul.f32 %v1111_v52, %v555_v48  ;;  %vm584_vm9 = vweird.f32 %v1111_v52 }
 0x237   : > { %v1115_v56 = vpop.eup %1114  ;;  %v588_v57 = vmul.f32 %v1113_v53, %v556_v49  ;;  %vm594_vm11 = vweird.f32 %v1113_v53  ;;  %vm1367_vm14 = vmor %vm583_vm8, %vm584_vm9 }
 0x238   : > { %v1117_v58 = vpop.eup %1116  ;;  %v579_v59 = vmul.f32 %v1111_v52, %v578_v55  ;;  %v558_v60 = vmul.f32 %v1115_v56, %v553_v50  ;;  %vm564_vm13 = vweird.f32 %v1115_v56  ;;  %vm595_vm1 = vmor %vm593_vm10, %vm594_vm11 }
 0x239   : > { %v589_v62 = vmul.f32 %v1113_v53, %v588_v57  ;;  %v568_v63 = vmul.f32 %v1117_v58, %v554_v51  ;;  %vm574_vm0 = vweird.f32 %v1117_v58  ;;  %vm565_vm2 = vmor %vm563_vm12, %vm564_vm13 }
 0x23a   : > { %v580_v0 = vmul.f32 0.5, %v579_v59  ;;  %v559_v27 = vmul.f32 %v1115_v56, %v558_v60  ;;  %vm575_vm3 = vmor %vm573_vm15, %vm574_vm0 }
 0x23b   : > { %v590_v1 = vmul.f32 0.5, %v589_v62  ;;  %v569_v2 = vmul.f32 %v1117_v58, %v568_v63 }
 0x23c   : > { %v581_v3 = vsub.f32 1.5, %v580_v0  ;;  %v560_v4 = vmul.f32 0.5, %v559_v27 }
 0x23d   : > { %v591_v6 = vsub.f32 1.5, %v590_v1  ;;  %v570_v7 = vmul.f32 0.5, %v569_v2 }
 0x23e   : > { %v582_v8 = vmul.f32 %v1111_v52, %v581_v3  ;;  %v561_v10 = vsub.f32 1.5, %v560_v4 }
 0x23f   : > { %v592_v11 = vmul.f32 %v1113_v53, %v591_v6  ;;  %v571_v13 = vsub.f32 1.5, %v570_v7 }
 0x240   : > { %v586_v14 = vsel %vm1367_vm14, %v1111_v52, %v582_v8  ;;  %v562_v15 = vmul.f32 %v1115_v56, %v561_v10 }
 0x241   : > { %v603_v17 = vmul.f32 %v599_v9, %v586_v14  ;;  %v596_v18 = vsel %vm595_vm1, %v1113_v53, %v592_v11  ;;  %v572_v19 = vmul.f32 %v1117_v58, %v571_v13 }
 0x242   : > { %v604_v21 = vmul.f32 %v600_v12, %v596_v18  ;;  %v566_v22 = vsel %vm565_vm2, %v1115_v56, %v562_v15 }
 0x243   : > { %v607_v23 = vmul.f32 %v603_v17, %v1346_v54  ;;  %631 = vst.msk [vmem:[#allocation4 + $0x10] sm:$0xff] %vm521_vm7, %v603_v17  ;;  %v601_v24 = vmul.f32 %v597_v16, %v566_v22  ;;  %v576_v25 = vsel %vm575_vm3, %v1117_v58, %v572_v19 }
 0x244   : > { %632 = vst.msk [vmem:[#allocation4 + $0x18] sm:$0xff] %vm521_vm7, %v604_v21  ;;  %v602_v26 = vmul.f32 %v598_v20, %v576_v25  ;;  %v608_v29 = vmul.f32 %v604_v21, %v1350_v61 }
 0x245   : > { %617 = vrot.lane.b32.xlu1 %v607_v23, %s1202_s14  ;;  %v605_v28 = vmul.f32 %v601_v24, %v1334_v39  ;;  %629 = vst.msk [vmem:[#allocation4] sm:$0xff] %vm521_vm7, %v601_v24 }
 0x246   : > { %630 = vst.msk [vmem:[#allocation4 + $0x8] sm:$0xff] %vm521_vm7, %v602_v26  ;;  %v606_v54 = vmul.f32 %v602_v26, %v1342_v47 }
 0x247   : > { %613 = vrot.lane.b32.xlu0 %v605_v28, %s1202_s14 }
 0x24d   : > { %619 = vrot.lane.b32.xlu1 %v608_v29, %s1202_s14 }
 0x24f   : > { %615 = vrot.lane.b32.xlu0 %v606_v54, %s1202_s14 }
 0x2b7   : > { %v618_v30 = vpop.permute.xlu1 %617 }
 0x2b8   : > { %v627_v31 = vsub.f32 %v599_v9, %v618_v30 }
 0x2b9   : > { %v614_v32 = vpop.permute.xlu0 %613 }
 0x2ba   : > { %641 = vrot.lane.b32.xlu0 %v627_v31, %s1203_s15  ;;  %v625_v33 = vsub.f32 %v597_v16, %v614_v32 }
 0x2bc   : > { %637 = vrot.lane.b32.xlu2 %v625_v33, %s1203_s15 }
 0x2bf   : > { %v620_v34 = vpop.permute.xlu1 %619 }
 0x2c0   : > { %v628_v39 = vsub.f32 %v600_v12, %v620_v34 }
 0x2c1   : > { %v616_v35 = vpop.permute.xlu0 %615 }
 0x2c2   : > { %643 = vrot.lane.b32.xlu1 %v628_v39, %s1203_s15  ;;  %v626_v36 = vsub.f32 %v598_v20, %v616_v35 }
 0x2c4   : > { %639 = vrot.lane.b32.xlu2 %v626_v36, %s1203_s15 }
 0x316   : > { %v638_v37 = vpop.permute.xlu2 %637 }
 0x317   : > { %649 = vst.msk [vmem:[#allocation5] sm:$0xff] %vm521_vm7, %v638_v37 }
 0x31e   : > { %v640_v61 = vpop.permute.xlu2 %639 }
 0x31f   : > { %650 = vst.msk [vmem:[#allocation5 + $0x8] sm:$0xff] %vm521_vm7, %v640_v61 }
 0x32c   : > { %v642_v47 = vpop.permute.xlu0 %641 }
 0x32d   : > { %651 = vst.msk [vmem:[#allocation5 + $0x10] sm:$0xff] %vm521_vm7, %v642_v47 }
 0x334   : > { %v644_v38 = vpop.permute.xlu1 %643 }
 0x335   : > { %652 = vst.msk [vmem:[#allocation5 + $0x18] sm:$0xff] %vm521_vm7, %v644_v38 }
 0x336 PF: > { %p1022_p9 = scmp.ne.s32.totalorder %s1186_s19, 1 }
 0x337   : > { %p1023_p10 = scmp.ne.s32.totalorder (!%p1022_p9), %s1182_s18, 0 }
 0x338   : > { %656 = sbr.rel (%p1022_p9) target bundleno = 1614 (0x64e), region = 56 }
 0x33d   : > { %660 = sbr.rel (%p1023_p10) target bundleno = 837 (0x345), region = 60 }
 0x342   : > { %vm661_vm4 = vcmask 7168   ;;  %v1204_v40 = vmov 0.0  }
 0x343   : > { %662 = vst.msk [vmem:[#allocation6] sm:$0xff] %vm661_vm4, %v1204_v40 }
 0x344   : > { %663 = vst.msk [vmem:[#allocation7] sm:$0xff] %vm661_vm4, %v1204_v40 }
 0x345 PF: > { %v710_v42 = vld [vmem:[#allocation5 + $0x18] sm:$0xff]  ;;  %v1205_v41 = vmov 0   ;;  %v709_v44 = vld [vmem:[#allocation5 + $0x10] sm:$0xff]  ;;  %v676_v46 = vld [vmem:[#allocation4 + $0x8] sm:$0xff]  ;;  %s1038_s19 = sshll.u32 %s1182_s18, 6  ;;  %vm748_vm5 = vcmask 261120  }
 0x346   : > { %v678_v43 = vld [vmem:[#allocation4 + $0x18] sm:$0xff]  ;;  %1119 = vset.pattern.permute.xlu1 %v1205_v41  ;;  %1118 = vset.pattern.permute.xlu0 %v1205_v41  ;;  %v677_v45 = vld [vmem:[#allocation4 + $0x10] sm:$0xff]  ;;  %v675_v48 = vld [vmem:[#allocation4] sm:$0xff]  ;;  %s666_s16 = scalar_lea.vmem [#allocation2], %s1038_s19  ;;  %s1030_s27 = sshll.u32 %s1182_s18, 8  ;;  %vm857_vm10 = vcmask 7168  }
 0x347   : > { %728 = vperm.xlu1 %1119, %v710_v42   ;;  %696 = vperm.xlu0 %1118, %v678_v43   ;;  %v708_v49 = vld [vmem:[#allocation5 + $0x8] sm:$0xff]  ;;  %v707_v50 = vld [vmem:[#allocation5] sm:$0xff]  ;;  %v674_v52 = vld [vmem:[%s666_s16 + $0x38] sm:$0xff]  ;;  %s1404_s28 = scvt.s32.f32 %s1030_s27  ;;  %s1039_s30 = sshll.u32 %s1182_s18, 4 }
 0x348   : > { %1120 = vset.pattern.permute.xlu2 %v1205_v41  ;;  %v673_v51 = vld [vmem:[%s666_s16 + $0x30] sm:$0xff]  ;;  %v671_v0 = vld [vmem:[%s666_s16 + $0x20] sm:$0xff]  ;;  %v672_v27 = vld [vmem:[%s666_s16 + $0x28] sm:$0xff]  ;;  %s794_s6 = scalar_lea.vmem [#allocation3], %s1039_s30  ;;  %p1031_p11 = scmp.ne.s32.totalorder %s1182_s18, 1 }
 0x349   : > { %723 = vperm.xlu2 %1120, %v709_v44   ;;  %v667_v6 = vld [vmem:[%s666_s16] sm:$0xff]  ;;  %v669_v9 = vld [vmem:[%s666_s16 + $0x10] sm:$0xff]  ;;  %v670_v10 = vld [vmem:[%s666_s16 + $0x18] sm:$0xff]  ;;  %s810_s29 = sadd.f32 256.0, %s1404_s28  ;;  %s836_s8 = smul.f32 256.0, %s1404_s28 }
 0x34a   : > { %v668_v11 = vld [vmem:[%s666_s16 + $0x8] sm:$0xff]  ;;  %v747_v29 = vld [vmem:[%s1436_s3] sm:$0xff]  ;;  %s1207_s18 = smov (!%p1031_p11), 1  }
 0x34b   : > { %v813_v54 = vstv %s810_s29  ;;  %v811_v43 = vld [vmem:[#allocation6] sm:$0xff] }
 0x34c   : > { %1121 = vrcp.f32 %v813_v54  ;;  %v825_v32 = vand.u32 2147483648, %v813_v54  ;;  %vm819_vm6 = vweird.f32 %v813_v54  ;;  %v823_v34 = vand.u32 2147483647, %v813_v54 }
 0x34e   : > { %v826_v35 = vor.u32 1.1754944e-38, %v825_v32  ;;  %vm824_vm9 = vcmp.eq.f32.partialorder %v823_v34, 8.507059e+37 }
 0x34f   : > { %691 = vperm.xlu0 %1118, %v677_v45   ;;  %686 = vperm.xlu1 %1119, %v676_v46  }
 0x351   : > { %681 = vperm.xlu2 %1120, %v675_v48  }
 0x352   : > { %v1122_v30 = vpop.eup %1121 }
 0x353   : > { %v815_v31 = vmul.f32 %v1122_v30, %v813_v54  ;;  %vm820_vm7 = vweird.f32 %v1122_v30 }
 0x354   : > { %vm821_vm8 = vmor %vm819_vm6, %vm820_vm7 }
 0x355   : > { %v816_v33 = vsub.f32 1.0, %v815_v31 }
 0x357   : > { %718 = vperm.xlu0 %1118, %v708_v49   ;;  %713 = vperm.xlu1 %1119, %v707_v50   ;;  %v817_v39 = vmul.f32 %v1122_v30, %v816_v33 }
 0x359   : > { %v818_v36 = vadd.f32 %v1122_v30, %v817_v39 }
 0x35b   : > { %v822_v37 = vsel %vm821_vm8, %v1122_v30, %v818_v36 }
 0x35c   : > { %v827_v61 = vsel %vm824_vm9, %v826_v35, %v822_v37 }
 0x35d   : > { %1045 = vpush %v827_v61 }
 0x38e   : > { %s1046_s7 = spop %1045 }
 0x38f   : > { %s829_s9 = smul.f32 256.0, %s1046_s7 }
 0x390   : > { %s853_s10 = smul.f32 %s1046_s7, %s836_s8 }
 0x391   : > { %v830_v44 = vstv %s829_s9 }
 0x392   : > { %v854_v49 = vstv %s853_s10 }
 0x3a3   : > { %v724_v56 = vpop.permute.xlu2 %723 }
 0x3ab   : > { %v682_v5 = vpop.permute.xlu2 %681 }
 0x3ac   : > { %v699_v14 = vmul.f32 %v682_v5, %v667_v6  ;;  %v700_v17 = vmul.f32 %v682_v5, %v668_v11 }
 0x3b9   : > { %v729_v53 = vpop.permute.xlu1 %728  ;;  %v697_v55 = vpop.permute.xlu0 %696 }
 0x3ba   : > { %v705_v57 = vmul.f32 %v697_v55, %v673_v51  ;;  %v706_v58 = vmul.f32 %v697_v55, %v674_v52 }
 0x3bc   : > { %v737_v59 = vadd.f32 %v729_v53, %v705_v57  ;;  %v738_v60 = vadd.f32 %v729_v53, %v706_v58  ;;  %v833_v58 = vld [vmem:[#allocation7] sm:$0xff] }
 0x3be   : > { %v745_v62 = vmax.f32 %v737_v59, 0.0  ;;  %v746_v63 = vmax.f32 %v738_v60, 0.0 }
 0x3c0   : > { %764 = vmatpush.msra.mxu0 %v745_v62  ;;  %784 = vmatpush.msra.mxu1 %v746_v63 }
 0x3c1   : > { %v692_v1 = vpop.permute.xlu0 %691  ;;  %v687_v2 = vpop.permute.xlu1 %686 }
 0x3c2   : > { %v703_v3 = vmul.f32 %v692_v1, %v671_v0  ;;  %v704_v4 = vmul.f32 %v692_v1, %v672_v27  ;;  %v701_v15 = vmul.f32 %v687_v2, %v669_v9  ;;  %v702_v16 = vmul.f32 %v687_v2, %v670_v10 }
 0x3c4   : > { %v735_v7 = vadd.f32 %v724_v56, %v703_v3  ;;  %v736_v8 = vadd.f32 %v724_v56, %v704_v4 }
 0x3c6   : > { %v743_v12 = vmax.f32 %v735_v7, 0.0  ;;  %v744_v13 = vmax.f32 %v736_v8, 0.0 }
 0x3c8   : > { %765 = vmatpush.msra.mxu0 %v743_v12  ;;  %785 = vmatpush.msra.mxu1 %v744_v13 }
 0x3c9   : > { %v719_v18 = vpop.permute.xlu0 %718  ;;  %v714_v19 = vpop.permute.xlu1 %713 }
 0x3ca   : > { %v733_v20 = vadd.f32 %v719_v18, %v701_v15  ;;  %v734_v21 = vadd.f32 %v719_v18, %v702_v16  ;;  %v731_v22 = vadd.f32 %v714_v19, %v699_v14  ;;  %v732_v23 = vadd.f32 %v714_v19, %v700_v17 }
 0x3cc   : > { %v741_v24 = vmax.f32 %v733_v20, 0.0  ;;  %v742_v25 = vmax.f32 %v734_v21, 0.0  ;;  %v739_v26 = vmax.f32 %v731_v22, 0.0  ;;  %v740_v28 = vmax.f32 %v732_v23, 0.0 }
 0x3ce   : > { %766 = vmatpush.msra.mxu0 %v741_v24  ;;  %786 = vmatpush.msra.mxu1 %v742_v25 }
 0x3d0   : > { %767 = vmatpush.msra.mxu0 %v739_v26  ;;  %787 = vmatpush.msra.mxu1 %v740_v28 }
 0x3d1   : > { %1026 = vmatmul.msk.f32.vlgmr.msra.gmra.mxu0 %vm748_vm5, %v747_v29  ;;  %1027 = vmatmul.msk.f32.vlgmr.msra.gmra.mxu1 %vm748_vm5, %v747_v29 }
 0x44e   : > { %v769_v47 = vpop.f32.mrf.mxu0  ;;  %v789_v38 = vpop.f32.mrf.mxu1 }
 0x44f   : > { %795 = vst [vmem:[%s794_s6] sm:$0xff] %v769_v47  ;;  %v797_v40 = vadd.f32 %v789_v38, %v769_v47 }
 0x450   : > { %796 = vst [vmem:[%s794_s6 + $0x8] sm:$0xff] %v789_v38 }
 0x451   : > { %798 = vadd.xlane.f32.xlu2 %v797_v40 }
 0x4c4   : > { %v799_v42 = vpop.xlane.xlu2 %798 }
 0x4c5   : > { %v800_v41 = vmul.f32 0.00390625, %v799_v42 }
 0x4c7   : > { %v812_v45 = vsub.f32 %v800_v41, %v811_v43  ;;  %v801_v46 = vsub.f32 %v769_v47, %v800_v41  ;;  %v802_v48 = vsub.f32 %v789_v38, %v800_v41 }
 0x4c9   : > { %v831_v50 = vmul.f32 %v830_v44, %v812_v45  ;;  %v835_v51 = vmul.f32 %v812_v45, %v812_v45  ;;  %v803_v52 = vmul.f32 %v801_v46, %v801_v46  ;;  %v804_v53 = vmul.f32 %v802_v48, %v802_v48 }
 0x4cb   : > { %v832_v55 = vadd.f32 %v831_v50, %v811_v43  ;;  %v855_v56 = vmul.f32 %v854_v49, %v835_v51  ;;  %v805_v57 = vadd.f32 %v804_v53, %v803_v52 }
 0x4cd   : > { %806 = vadd.xlane.f32.xlu0 %v805_v57  ;;  %858 = vst.msk [vmem:[#allocation6] sm:$0xff] %vm857_vm10, %v832_v55 }
 0x540   : > { %v807_v59 = vpop.xlane.xlu0 %806 }
 0x541   : > { %v834_v60 = vadd.f32 %v833_v58, %v807_v59  ;;  %863 = sbr.rel (%p1031_p11) target bundleno = 1614 (0x64e), region = 64 }
 0x543   : > { %v856_v62 = vadd.f32 %v855_v56, %v834_v60 }
 0x545   : > { %859 = vst.msk [vmem:[#allocation7] sm:$0xff] %vm857_vm10, %v856_v62 }
 0x546   : > { %v879_v63 = vmul.f32 %v856_v62, %v827_v61  ;;  %v1206_v0 = vmov 0   ;;  %v891_v7 = vld [vmem:[%s1437_s4] sm:$0xff]  ;;  %v1208_v11 = vmov 1   ;;  %v899_v14 = vld [vmem:[#allocation3] sm:$0xff]  ;;  %v900_v15 = vld [vmem:[#allocation3 + $0x8] sm:$0xff] }
 0x547   : > { %1123 = vset.pattern.permute.xlu0 %v1206_v0  ;;  %1124 = vset.pattern.permute.xlu1 %v1208_v11  ;;  %v918_v16 = vld [vmem:[#allocation3 + $0x10] sm:$0xff]  ;;  %v919_v18 = vld [vmem:[#allocation3 + $0x18] sm:$0xff] }
 0x548   : > { %v880_v27 = vadd.f32 1e-05, %v879_v63 }
 0x54a   : > { %1126 = vrsqrt.f32 %v880_v27  ;;  %vm887_vm11 = vweird.f32 %v880_v27 }
 0x550   : > { %v1127_v1 = vpop.eup %1126 }
 0x551   : > { %v882_v2 = vmul.f32 %v1127_v1, %v880_v27  ;;  %vm888_vm12 = vweird.f32 %v1127_v1 }
 0x552   : > { %vm889_vm13 = vmor %vm887_vm11, %vm888_vm12 }
 0x553   : > { %v883_v3 = vmul.f32 %v1127_v1, %v882_v2 }
 0x555   : > { %v884_v4 = vmul.f32 0.5, %v883_v3 }
 0x557   : > { %v885_v5 = vsub.f32 1.5, %v884_v4 }
 0x559   : > { %v886_v6 = vmul.f32 %v1127_v1, %v885_v5 }
 0x55b   : > { %v890_v8 = vsel %vm889_vm13, %v1127_v1, %v886_v6 }
 0x55c   : > { %v892_v9 = vmul.f32 %v891_v7, %v890_v8 }
 0x55e   : > { %v893_v10 = vmul.f32 %v892_v9, %v832_v55 }
 0x560   : > { %895 = vrot.lane.b32.xlu0 %v893_v10, %s1207_s18 }
 0x568   : > { %903 = vperm.xlu0 %1123, %v892_v9  }
 0x570   : > { %1125 = vset.pattern.permute.xlu0 %v1208_v11 }
 0x5d2   : > { %v896_v12 = vpop.permute.xlu0 %895 }
 0x5d3   : > { %v898_v13 = vsub.f32 %v891_v7, %v896_v12 }
 0x5d5   : > { %910 = vperm.xlu1 %1124, %v898_v13  }
 0x5da   : > { %v904_v17 = vpop.permute.xlu0 %903 }
 0x5db   : > { %v906_v19 = vmul.f32 %v904_v17, %v899_v14  ;;  %v907_v20 = vmul.f32 %v904_v17, %v900_v15  ;;  %v920_v21 = vmul.f32 %v918_v16, %v904_v17  ;;  %v921_v22 = vmul.f32 %v919_v18, %v904_v17 }
 0x647   : > { %v911_v23 = vpop.permute.xlu1 %910 }
 0x648   : > { %v913_v24 = vadd.f32 %v911_v23, %v906_v19  ;;  %v914_v25 = vadd.f32 %v911_v23, %v907_v20  ;;  %v922_v26 = vadd.f32 %v920_v21, %v911_v23  ;;  %v923_v28 = vadd.f32 %v921_v22, %v911_v23 }
 0x64a   : > { %915 = vst [vmem:[#allocation8] sm:$0xff] %v913_v24 }
 0x64b   : > { %916 = vst [vmem:[#allocation8 + $0x8] sm:$0xff] %v914_v25 }
 0x64c   : > { %925 = vst [vmem:[#allocation8 + $0x10] sm:$0xff] %v922_v26 }
 0x64d   : > { %926 = vst [vmem:[#allocation8 + $0x18] sm:$0xff] %v923_v28 }
 0x64e PF: > { %p1051_p12 = scmp.eq.s32.totalorder %s995_s23, 3  ;;  %s934_s15 = sshll.u32 %s1438_s5, 4  ;;  %s935_s15 = int_to_ptr.hbm [resolvable:$true] %s934_s15 }
 0x64f   : > { %s1209_s19 = smov [#allocation8]   ;;  %s1210_s17 = smov 256  }
 0x650   : > { %s932_s16 = sshll.u32 %s1209_s19, 4  ;;  %s1211_s26 = smov 16   ;;  %s933_s16 = int_to_ptr.vmem [resolvable:$true] %s932_s16 }
 0x651   : > { %1048 = dma.vmem_to_hbm [thread:$0]  (%p1051_p12), %s933_s16, 512, %s935_s15, [#allocation9], %s1210_s17, %s1210_s17, %s1211_s26  }
 0x652   : > { %1177 = dma.done.wait (%p1051_p12), [#allocation9], 512  }
 0x653   : > { %1179 = vsyncadd (%p1051_p12), [#allocation9], 4294966784 }
 0x654 PF: > { %s16_s22 = sadd.s32 1, %s1198_s22   ;;  %s1441_s18 = smov %s1190_s20 }
 0x655   : > { %p13_p13 = scmp.ge.s32.totalorder %s16_s22, 6   ;;  %s1442_s19 = smov %s1194_s21 }
 0x656   : > { %s1443_s20 = smov %s1446_s24  ;;  %s1444_s21 = smov %s1450_s25 }
 0x657   :  { %15 = sbr.rel (!%p13_p13) target bundleno = 3 (0x3), region = 96 }
 0x65c   :  { %951 = vsyncpa [#allocation9], 1 }
 0x65d   :  { %953 = vsyncpa [#allocation9 + $0x1], 1 }

</bundles_post_ra>
